<compile_context>
chip_gen: v7x
topology: tpu7x:2x2x1
jax: 0.10.0
libtpu: 0.0.40
codegen_flags: <defaults>
</compile_context>

<pallas_src>
import functools

import jax
import jax.numpy as jnp
from jax.experimental import pallas as pl
from jax.experimental.pallas import tpu as pltpu


def _round_up(x, m):
    return (x + m - 1) // m * m


def _fc_vi_lr_kernel(x_ref, wm_ref, ew_ref, bm_ref, blv_ref, eps_ref, o_ref,
                     mu_acc, var_acc):
    k = pl.program_id(2)

    @pl.when(k == 0)
    def _init():
        mu_acc[...] = jnp.zeros_like(mu_acc)
        var_acc[...] = jnp.zeros_like(var_acc)

    # MXU work: bf16 operands, f32 accumulation.
    x_bf = x_ref[...]                                  # (tm, tk) bf16
    x_f32 = x_bf.astype(jnp.float32)
    xsq_bf = (x_f32 * x_f32).astype(jnp.bfloat16)      # square in f32, cast back

    mu_acc[...] += jnp.dot(x_bf, wm_ref[...],
                           preferred_element_type=jnp.float32)
    var_acc[...] += jnp.dot(xsq_bf, ew_ref[...],
                            preferred_element_type=jnp.float32)

    @pl.when(k == pl.num_programs(2) - 1)
    def _finalize():
        ind_mu = mu_acc[...] + bm_ref[...].astype(jnp.float32)       # (tm,tn)+(1,tn)
        ind_var = var_acc[...] + jnp.exp(blv_ref[...].astype(jnp.float32))
        s = eps_ref[...].astype(jnp.float32) * jnp.sqrt(ind_var) + ind_mu
        o_ref[...] = jnp.maximum(s, 0.0).astype(o_ref.dtype)


@functools.partial(jax.jit, static_argnames=("tm", "tn", "tk"))
def fc_vi_lr_forward(x, w_mean, w_logvar, b_mean, b_logvar, eps,
                     *, tm=128, tn=256, tk=512):
    """Pallas forward for FC_VI_LR with relu activation.

    x:        (batch, indim)  float32
    w_mean:   (indim, outdim) float32
    w_logvar: (indim, outdim) float32
    b_mean:   (outdim,)       float32
    b_logvar: (outdim,)       float32
    eps:      (batch, outdim) float32   standard-normal noise
    """
    batch, indim = x.shape
    outdim = w_mean.shape[1]

    # Hoist exp(w_logvar) out of the kernel: computed once, not once per
    # batch tile on the single EUP slot.
    exp_w_logvar = jnp.exp(w_logvar.astype(jnp.float32))

    # MXU operands in bf16 (halves HBM traffic for the two weight streams).
    x_bf = x.astype(jnp.bfloat16)
    wm_bf = w_mean.astype(jnp.bfloat16)
    ew_bf = exp_w_logvar.astype(jnp.bfloat16)

    # Tile sizes: respect (8, 128) layout; shrink tiles for small problems.
    tm = min(tm, _round_up(batch, 8))
    tn = min(tn, _round_up(outdim, 128))
    tk = min(tk, _round_up(indim, 128))
    mp = _round_up(batch, tm)
    np_ = _round_up(outdim, tn)
    kp = _round_up(indim, tk)

    # Zero-padding is exact: padded rows of x and padded rows of the weight
    # matrices contribute 0 to both matmuls (we pad exp(w_logvar) itself, not
    # w_logvar, so padded variance rows are 0 and not exp(0)=1). Padded
    # output rows/cols are sliced off below.
    x_p = jnp.pad(x_bf, ((0, mp - batch), (0, kp - indim)))
    wm_p = jnp.pad(wm_bf, ((0, kp - indim), (0, np_ - outdim)))
    ew_p = jnp.pad(ew_bf, ((0, kp - indim), (0, np_ - outdim)))
    bm_p = jnp.pad(b_mean.astype(jnp.float32).reshape(1, outdim),
                   ((0, 0), (0, np_ - outdim)))
    blv_p = jnp.pad(b_logvar.astype(jnp.float32).reshape(1, outdim),
                    ((0, 0), (0, np_ - outdim)))
    eps_p = jnp.pad(eps.astype(jnp.float32),
                    ((0, mp - batch), (0, np_ - outdim)))

    grid = (mp // tm, np_ // tn, kp // tk)

    out = pl.pallas_call(
        _fc_vi_lr_kernel,
        out_shape=jax.ShapeDtypeStruct((mp, np_), jnp.float32),
        grid_spec=pltpu.PrefetchScalarGridSpec(
            num_scalar_prefetch=0,
            grid=grid,
            in_specs=[
                pl.BlockSpec((tm, tk), lambda i, j, k: (i, k)),  # x (bf16)
                pl.BlockSpec((tk, tn), lambda i, j, k: (k, j)),  # w_mean (bf16)
                pl.BlockSpec((tk, tn), lambda i, j, k: (k, j)),  # exp(w_logvar) (bf16)
                pl.BlockSpec((1, tn), lambda i, j, k: (0, j)),   # b_mean (f32)
                pl.BlockSpec((1, tn), lambda i, j, k: (0, j)),   # b_logvar (f32)
                pl.BlockSpec((tm, tn), lambda i, j, k: (i, j)),  # eps (f32)
            ],
            out_specs=pl.BlockSpec((tm, tn), lambda i, j, k: (i, j)),
            scratch_shapes=[
                pltpu.VMEM((tm, tn), jnp.float32),  # ind_mu accumulator
                pltpu.VMEM((tm, tn), jnp.float32),  # ind_var accumulator
            ],
        ),
        compiler_params=pltpu.CompilerParams(
            dimension_semantics=("parallel", "parallel", "arbitrary")),
    )(x_p, wm_p, ew_p, bm_p, blv_p, eps_p)

    return out[:batch, :outdim]


def reference_forward(x, w_mean, w_logvar, b_mean, b_logvar, eps):
    """Pure-f32 reference (matches the PyTorch module)."""
    ind_mu = x @ w_mean + b_mean
    ind_var = (x ** 2) @ jnp.exp(w_logvar) + jnp.exp(b_logvar)
    s = eps * jnp.sqrt(ind_var) + ind_mu
    return jnp.maximum(s, 0.0)


def reference_forward_bf16_mxu(x, w_mean, w_logvar, b_mean, b_logvar, eps):
    """Reference mirroring the kernel's bf16 MXU operands / f32 epilogue."""
    xb = x.astype(jnp.bfloat16)
    xf = xb.astype(jnp.float32)
    xsq = (xf * xf).astype(jnp.bfloat16)
    wm = w_mean.astype(jnp.bfloat16)
    ew = jnp.exp(w_logvar).astype(jnp.bfloat16)
    ind_mu = jnp.dot(xb, wm, preferred_element_type=jnp.float32) + b_mean
    ind_var = jnp.dot(xsq, ew, preferred_element_type=jnp.float32) + jnp.exp(b_logvar)
    s = eps * jnp.sqrt(ind_var) + ind_mu
    return jnp.maximum(s, 0.0)


if __name__ == "__main__":
    # Module __init__(indim, outdim, batch, activation='relu', ...)
    batch, indim, outdim = 8, 32, 32

    key = jax.random.PRNGKey(0)
    kx, kwm, kwlv, kbm, kblv, keps = jax.random.split(key, 6)

    x = jax.random.normal(kx, (batch, indim), dtype=jnp.float32)
    w_mean = jax.random.normal(kwm, (indim, outdim), dtype=jnp.float32)
    w_logvar = jax.random.normal(kwlv, (indim, outdim), dtype=jnp.float32)
    b_mean = jax.random.normal(kbm, (outdim,), dtype=jnp.float32)
    b_logvar = jax.random.normal(kblv, (outdim,), dtype=jnp.float32)
    # eps corresponds to self.sampler.normal_() in the torch module
    # (RNG is done in plain JAX, outside the kernel).
    eps = jax.random.normal(keps, (batch, outdim), dtype=jnp.float32)

    out = fc_vi_lr_forward(x, w_mean, w_logvar, b_mean, b_logvar, eps)
    out = jax.block_until_ready(out)
    assert out.shape == (batch, outdim)

    # Tight check vs a reference that mirrors the kernel's bf16 MXU casts.
    ref_bf16 = reference_forward_bf16_mxu(x, w_mean, w_logvar, b_mean, b_logvar, eps)
    assert jnp.allclose(out, ref_bf16, atol=2e-2, rtol=2e-2), \
        "mismatch vs bf16-mirrored reference"

    # Loose sanity check vs the pure-f32 reference (bf16 MXU quantization).
    ref_f32 = reference_forward(x, w_mean, w_logvar, b_mean, b_logvar, eps)
    assert jnp.allclose(out, ref_f32, atol=5e-1, rtol=1e-1), \
        "mismatch vs f32 reference"

    print("KERNEL_OK")
</pallas_src>

<mosaic_0001>
module attributes {stable_mosaic.version = 11 : i64} {
  func.func @_fc_vi_lr_kernel(%arg0: i32, %arg1: i32, %arg2: i32, %arg3: memref<8x128xbf16, #tpu.memory_space<vmem>>, %arg4: memref<128x128xbf16, #tpu.memory_space<vmem>>, %arg5: memref<128x128xbf16, #tpu.memory_space<vmem>>, %arg6: memref<1x128xf32, #tpu.memory_space<vmem>>, %arg7: memref<1x128xf32, #tpu.memory_space<vmem>>, %arg8: memref<8x128xf32, #tpu.memory_space<vmem>>, %arg9: memref<8x128xf32, #tpu.memory_space<vmem>>, %arg10: memref<8x128xf32, #tpu.memory_space<vmem>>, %arg11: memref<8x128xf32, #tpu.memory_space<vmem>>) attributes {dimension_semantics = [#tpu.dimension_semantics<parallel>, #tpu.dimension_semantics<parallel>, #tpu.dimension_semantics<arbitrary>], iteration_bounds = array<i64: 1, 1, 1>, scalar_prefetch = 0 : i64, scratch_operands = 2 : i64, tpu.core_type = #tpu.core_type<tc>, window_params = [{transform_indices = @transform_0, window_bounds = array<i64: 8, 128>}, {transform_indices = @transform_1, window_bounds = array<i64: 128, 128>}, {transform_indices = @transform_2, window_bounds = array<i64: 128, 128>}, {transform_indices = @transform_3, window_bounds = array<i64: 1, 128>}, {transform_indices = @transform_4, window_bounds = array<i64: 1, 128>}, {transform_indices = @transform_5, window_bounds = array<i64: 8, 128>}, {transform_indices = @transform_6, window_bounds = array<i64: 8, 128>}]} {
    %c0_i32 = arith.constant 0 : i32
    %0 = arith.cmpi eq, %arg2, %c0_i32 : i32
    %1 = arith.extui %0 : i1 to i32
    %c0_i32_0 = arith.constant 0 : i32
    %2 = arith.cmpi ne, %1, %c0_i32_0 : i32
    scf.if %2 {
      %cst_17 = arith.constant 0.000000e+00 : f32
      %20 = vector.broadcast %cst_17 : f32 to vector<8x128xf32>
      %c0_18 = arith.constant 0 : index
      %c0_19 = arith.constant 0 : index
      %21 = vector.load %arg10[%c0_18, %c0_19] : memref<8x128xf32, #tpu.memory_space<vmem>>, vector<8x128xf32>
      tpu.vector_store %arg10[%c0_18, %c0_19], %20 {strides = array<i32>} : memref<8x128xf32, #tpu.memory_space<vmem>>, vector<8x128xf32>,
      %cst_20 = arith.constant 0.000000e+00 : f32
      %22 = vector.broadcast %cst_20 : f32 to vector<8x128xf32>
      %c0_21 = arith.constant 0 : index
      %c0_22 = arith.constant 0 : index
      %23 = vector.load %arg11[%c0_21, %c0_22] : memref<8x128xf32, #tpu.memory_space<vmem>>, vector<8x128xf32>
      tpu.vector_store %arg11[%c0_21, %c0_22], %22 {strides = array<i32>} : memref<8x128xf32, #tpu.memory_space<vmem>>, vector<8x128xf32>,
    } else {
    }
    %c0 = arith.constant 0 : index
    %c0_1 = arith.constant 0 : index
    %3 = vector.load %arg3[%c0, %c0_1] : memref<8x128xbf16, #tpu.memory_space<vmem>>, vector<8x128xbf16>
    %4 = arith.extf %3 : vector<8x128xbf16> to vector<8x128xf32>
    %5 = arith.mulf %4, %4 : vector<8x128xf32>
    %6 = arith.truncf %5 : vector<8x128xf32> to vector<8x128xbf16>
    %c0_2 = arith.constant 0 : index
    %c0_3 = arith.constant 0 : index
    %7 = vector.load %arg10[%c0_2, %c0_3] : memref<8x128xf32, #tpu.memory_space<vmem>>, vector<8x128xf32>
    %c0_4 = arith.constant 0 : index
    %c0_5 = arith.constant 0 : index
    %8 = vector.load %arg4[%c0_4, %c0_5] : memref<128x128xbf16, #tpu.memory_space<vmem>>, vector<128x128xbf16>
    %cst = arith.constant dense<0.000000e+00> : vector<8x128xf32>
    %9 = tpu.matmul %3, %8, %cst {dimension_numbers = #tpu.dot_dimension_numbers<[1], [0], [0], [1], [0, 0, 1, 1], [], []>} : vector<8x128xbf16>, vector<128x128xbf16>, vector<8x128xf32> -> vector<8x128xf32>
    %10 = arith.addf %7, %9 : vector<8x128xf32>
    %c0_6 = arith.constant 0 : index
    %c0_7 = arith.constant 0 : index
    %11 = vector.load %arg10[%c0_6, %c0_7] : memref<8x128xf32, #tpu.memory_space<vmem>>, vector<8x128xf32>
    tpu.vector_store %arg10[%c0_6, %c0_7], %10 {strides = array<i32>} : memref<8x128xf32, #tpu.memory_space<vmem>>, vector<8x128xf32>,
    %c0_8 = arith.constant 0 : index
    %c0_9 = arith.constant 0 : index
    %12 = vector.load %arg11[%c0_8, %c0_9] : memref<8x128xf32, #tpu.memory_space<vmem>>, vector<8x128xf32>
    %c0_10 = arith.constant 0 : index
    %c0_11 = arith.constant 0 : index
    %13 = vector.load %arg5[%c0_10, %c0_11] : memref<128x128xbf16, #tpu.memory_space<vmem>>, vector<128x128xbf16>
    %cst_12 = arith.constant dense<0.000000e+00> : vector<8x128xf32>
    %14 = tpu.matmul %6, %13, %cst_12 {dimension_numbers = #tpu.dot_dimension_numbers<[1], [0], [0], [1], [0, 0, 1, 1], [], []>} : vector<8x128xbf16>, vector<128x128xbf16>, vector<8x128xf32> -> vector<8x128xf32>
    %15 = arith.addf %12, %14 : vector<8x128xf32>
    %c0_13 = arith.constant 0 : index
    %c0_14 = arith.constant 0 : index
    %16 = vector.load %arg11[%c0_13, %c0_14] : memref<8x128xf32, #tpu.memory_space<vmem>>, vector<8x128xf32>
    tpu.vector_store %arg11[%c0_13, %c0_14], %15 {strides = array<i32>} : memref<8x128xf32, #tpu.memory_space<vmem>>, vector<8x128xf32>,
    %c0_i32_15 = arith.constant 0 : i32
    %17 = arith.cmpi eq, %arg2, %c0_i32_15 : i32
    %18 = arith.extui %17 : i1 to i32
    %c0_i32_16 = arith.constant 0 : i32
    %19 = arith.cmpi ne, %18, %c0_i32_16 : i32
    scf.if %19 {
      %c0_17 = arith.constant 0 : index
      %c0_18 = arith.constant 0 : index
      %20 = vector.load %arg10[%c0_17, %c0_18] : memref<8x128xf32, #tpu.memory_space<vmem>>, vector<8x128xf32>
      %c0_19 = arith.constant 0 : index
      %c0_20 = arith.constant 0 : index
      %21 = vector.load %arg6[%c0_19, %c0_20] : memref<1x128xf32, #tpu.memory_space<vmem>>, vector<1x128xf32>
      %22 = vector.broadcast %21 : vector<1x128xf32> to vector<8x128xf32>
      %23 = arith.addf %20, %22 : vector<8x128xf32>
      %c0_21 = arith.constant 0 : index
      %c0_22 = arith.constant 0 : index
      %24 = vector.load %arg11[%c0_21, %c0_22] : memref<8x128xf32, #tpu.memory_space<vmem>>, vector<8x128xf32>
      %c0_23 = arith.constant 0 : index
      %c0_24 = arith.constant 0 : index
      %25 = vector.load %arg7[%c0_23, %c0_24] : memref<1x128xf32, #tpu.memory_space<vmem>>, vector<1x128xf32>
      %26 = math.exp %25 : vector<1x128xf32>
      %27 = vector.broadcast %26 : vector<1x128xf32> to vector<8x128xf32>
      %28 = arith.addf %24, %27 : vector<8x128xf32>
      %c0_25 = arith.constant 0 : index
      %c0_26 = arith.constant 0 : index
      %29 = vector.load %arg8[%c0_25, %c0_26] : memref<8x128xf32, #tpu.memory_space<vmem>>, vector<8x128xf32>
      %30 = math.sqrt %28 : vector<8x128xf32>
      %31 = arith.mulf %29, %30 : vector<8x128xf32>
      %32 = arith.addf %31, %23 : vector<8x128xf32>
      %cst_27 = arith.constant 0.000000e+00 : f32
      %33 = vector.broadcast %cst_27 : f32 to vector<8x128xf32>
      %34 = arith.maximumf %32, %33 : vector<8x128xf32>
      %c0_28 = arith.constant 0 : index
      %c0_29 = arith.constant 0 : index
      %35 = vector.load %arg9[%c0_28, %c0_29] : memref<8x128xf32, #tpu.memory_space<vmem>>, vector<8x128xf32>
      tpu.vector_store %arg9[%c0_28, %c0_29], %34 {strides = array<i32>} : memref<8x128xf32, #tpu.memory_space<vmem>>, vector<8x128xf32>,
    } else {
    }
    return
  }
  func.func @transform_0(%arg0: i32, %arg1: i32, %arg2: i32) -> (i32, i32) {
    %c0_i32 = arith.constant 0 : i32
    return %arg0, %arg2 : i32, i32
  }
  func.func @transform_1(%arg0: i32, %arg1: i32, %arg2: i32) -> (i32, i32) {
    %c0_i32 = arith.constant 0 : i32
    return %arg2, %arg1 : i32, i32
  }
  func.func @transform_2(%arg0: i32, %arg1: i32, %arg2: i32) -> (i32, i32) {
    %c0_i32 = arith.constant 0 : i32
    return %arg2, %arg1 : i32, i32
  }
  func.func @transform_3(%arg0: i32, %arg1: i32, %arg2: i32) -> (i32, i32) {
    %c0_i32 = arith.constant 0 : i32
    %c0_i32_0 = arith.constant 0 : i32
    return %c0_i32, %arg1 : i32, i32
  }
  func.func @transform_4(%arg0: i32, %arg1: i32, %arg2: i32) -> (i32, i32) {
    %c0_i32 = arith.constant 0 : i32
    %c0_i32_0 = arith.constant 0 : i32
    return %c0_i32, %arg1 : i32, i32
  }
  func.func @transform_5(%arg0: i32, %arg1: i32, %arg2: i32) -> (i32, i32) {
    %c0_i32 = arith.constant 0 : i32
    return %arg0, %arg1 : i32, i32
  }
  func.func @transform_6(%arg0: i32, %arg1: i32, %arg2: i32) -> (i32, i32) {
    %c0_i32 = arith.constant 0 : i32
    return %arg0, %arg1 : i32, i32
  }
}

</mosaic_0001>

<bundles_post_ra>
// kernel: fc_vi_lr_forward.1
= control target key start
LH: loop header
LB: loop body
LE: loop exit
PB: predicated region body
PF: predicated region fallthrough
CT: control target
= control target key end

     0   :  { %v420_v1 = vmov 0.0   ;;  %vm421_vm0 = vmmov 0   ;;  %s530_s0 = inlined_call_operand.vmem [shape: bf16[8,128], index: 0, kind: input, shape index: {}]   ;;  %s531_s1 = inlined_call_operand.vmem [shape: bf16[128,128], index: 1, kind: input, shape index: {}]   ;;  %s532_s2 = inlined_call_operand.vmem [shape: bf16[128,128], index: 2, kind: input, shape index: {}]   ;;  %s533_s3 = inlined_call_operand.vmem [shape: f32[1,128], index: 3, kind: input, shape index: {}]   ;;  %s534_s4 = inlined_call_operand.vmem [shape: f32[1,128], index: 4, kind: input, shape index: {}]   ;;  %s535_s5 = inlined_call_operand.vmem [shape: f32[8,128], index: 5, kind: input, shape index: {}]   ;;  %s536_s6 = inlined_call_operand.hbm [shape: f32[8,128], index: 6, kind: output, shape index: {}]  }
   0x1   :  { %v376_v0 = vld [vmem:[%s532_s2] sm:$0xff]   ;;  %353 = vmatprep.subr.bf16.mxu1 %v420_v1  ;;  %333 = vmatprep.subr.bf16.mxu0 %v420_v1  ;;  %v377_v2 = vld [vmem:[%s532_s2 + $0x8] sm:$0xff]   ;;  %v378_v4 = vld [vmem:[%s532_s2 + $0x10] sm:$0xff]  }
   0x2   :  { %354 = vmatpush3.bf16.msra.mxu1 %v376_v0  ;;  %369 = vmatprep.mubr.msk.bf16.mxu1 %vm421_vm0, %v420_v1  ;;  %v380_v3 = vld [vmem:[%s531_s1] sm:$0xff]   ;;  %v382_v5 = vld [vmem:[%s531_s1 + $0x8] sm:$0xff]   ;;  %v379_v6 = vld [vmem:[%s532_s2 + $0x18] sm:$0xff]  }
   0x3   :  { %355 = vmatprep.subr.bf16.mxu1 %v420_v1  ;;  %349 = vmatprep.mubr.msk.bf16.mxu0 %vm421_vm0, %v420_v1  ;;  %v384_v7 = vld [vmem:[%s531_s1 + $0x10] sm:$0xff]   ;;  %v381_v8 = vld [vmem:[%s532_s2 + $0x20] sm:$0xff]   ;;  %v386_v9 = vld [vmem:[%s531_s1 + $0x18] sm:$0xff]  }
   0x4   :  { %334 = vmatpush3.bf16.msra.mxu0 %v380_v3 }
   0x5   :  { %335 = vmatprep.subr.bf16.mxu0 %v420_v1 }
   0x6   :  { %356 = vmatpush3.bf16.msra.mxu1 %v377_v2 }
   0x7   :  { %357 = vmatprep.subr.bf16.mxu1 %v420_v1 }
   0x8   :  { %336 = vmatpush3.bf16.msra.mxu0 %v382_v5 }
   0x9   :  { %337 = vmatprep.subr.bf16.mxu0 %v420_v1 }
   0xa   :  { %358 = vmatpush3.bf16.msra.mxu1 %v378_v4 }
   0xb   :  { %359 = vmatprep.subr.bf16.mxu1 %v420_v1 }
   0xc   :  { %338 = vmatpush3.bf16.msra.mxu0 %v384_v7 }
   0xd   :  { %339 = vmatprep.subr.bf16.mxu0 %v420_v1 }
   0xe   :  { %360 = vmatpush3.bf16.msra.mxu1 %v379_v6 }
   0xf   :  { %361 = vmatprep.subr.bf16.mxu1 %v420_v1 }
  0x10   :  { %11 = vsyncpa [#allocation5], 0  ;;  %v383_v10 = vld [vmem:[%s532_s2 + $0x28] sm:$0xff]   ;;  %340 = vmatpush3.bf16.msra.mxu0 %v386_v9  ;;  %v388_v11 = vld [vmem:[%s531_s1 + $0x20] sm:$0xff]   ;;  %v266_v23 = vlaneseq  ;;  %s422_s9 = smov [#allocation4]  }
  0x11   :  { %v31_v12 = vld [vmem:[%s530_s0] sm:$0xf]  ;;  %341 = vmatprep.subr.bf16.mxu0 %v420_v1  ;;  %v385_v14 = vld [vmem:[%s532_s2 + $0x30] sm:$0xff]   ;;  %v389_v15 = vld [vmem:[%s531_s1 + $0x28] sm:$0xff]   ;;  %s290_s10 = sshll.u32 %s422_s9, 4  ;;  %s291_s10 = int_to_ptr.vmem [resolvable:$true] %s290_s10 }
  0x12   :  { %362 = vmatpush3.bf16.msra.mxu1 %v381_v8  ;;  %v32_v13 = vunpack.c.l.bf16 %v31_v12  ;;  %v387_v17 = vld [vmem:[%s532_s2 + $0x38] sm:$0xff]   ;;  %v390_v18 = vld [vmem:[%s531_s1 + $0x30] sm:$0xff]   ;;  %v262_v21 = vld [vmem:[%s534_s4] sm:$0x1]  ;;  %v267_v24 = vshrl.u32 %v266_v23, 7  ;;  %s396_s11 = scalar_lea.vmem %s291_s10, 128  ;;  %p401_p1 = scmp.lt.s32.totalorder %s291_s10, %s291_s10 }
  0x13   :  { %363 = vmatprep.subr.bf16.mxu1 %v420_v1  ;;  %v391_v20 = vld [vmem:[%s531_s1 + $0x38] sm:$0xff]   ;;  %v263_v22 = vmul.f32 1.442695, %v262_v21  ;;  %v314_v38 = vld [vmem:[%s533_s3] ss:$0 sm:$0xff]  ;;  %p397_p0 = scmp.ne.s32.totalorder %s291_s10, %s396_s11  ;;  %p402_p2 = scmp.lt.s32.totalorder %s396_s11, %s396_s11 }
  0x14   :  { %342 = vmatpush3.bf16.msra.mxu0 %v388_v11  ;;  %v33_v16 = vmul.f32 %v32_v13, %v32_v13  ;;  %v268_v25 = vsub.s32 0, %v267_v24  ;;  %v272_v40 = vld [vmem:[%s535_s5] sm:$0xff] }
  0x15   :  { %343 = vmatprep.subr.bf16.mxu0 %v420_v1  ;;  %392 = vpow2.f32 %v263_v22  ;;  %p403_p3 = por %p402_p2, %p401_p1 }
  0x16   :  { %364 = vmatpush3.bf16.msra.mxu1 %v383_v10  ;;  %v34_v19 = vpack.c.bf16 %v33_v16, %v33_v16 }
  0x17   :  { %365 = vmatprep.subr.bf16.mxu1 %v420_v1  ;;  %p404_p4 = pnand %p403_p3, %p397_p0 }
  0x18   :  { %344 = vmatpush3.bf16.msra.mxu0 %v389_v15 }
  0x19   :  { %345 = vmatprep.subr.bf16.mxu0 %v420_v1 }
  0x1a   :  { %366 = vmatpush3.bf16.msra.mxu1 %v385_v14 }
  0x1b   :  { %367 = vmatprep.subr.bf16.mxu1 %v420_v1 }
  0x1c   :  { %346 = vmatpush3.bf16.msra.mxu0 %v390_v18 }
  0x1d   :  { %347 = vmatprep.subr.bf16.mxu0 %v420_v1 }
  0x1e   :  { %368 = vmatpush3.bf16.msra.mxu1 %v387_v17 }
  0x1f   :  { %v393_v26 = vpop.eup %392 }
  0x20   :  { %348 = vmatpush3.bf16.msra.mxu0 %v391_v20  ;;  %v269_v27 = vrot.slane %v393_v26, %v268_v25 }
  0x21   :  { %370 = vmatmul.mubr.bf16.vlgmr.msra.gmra.mrb[0].mxu1 %v34_v19 }
  0x23   :  { %350 = vmatmul.mubr.bf16.vlgmr.msra.gmra.mrb[0].mxu0 %v31_v12 }
  0xf4   :  { %v241_v28 = vpop.f32.mrb[0].mxu1 }
  0xf5   :  { %v271_v29 = vadd.f32 %v269_v27, %v241_v28  ;;  %v371_v30 = vpop.f32.mrb[1].mxu1 }
  0xf6   :  { %v244_v31 = vpop.f32.mrb[2].mxu1  ;;  %v134_v33 = vpop.f32.mrb[0].mxu0 }
  0xf7   :  { %394 = vrsqrt.f32 %v271_v29  ;;  %v372_v32 = vpop.f32.mrb[3].mxu1  ;;  %v351_v34 = vpop.f32.mrb[1].mxu0  ;;  %vm275_vm1 = vcmp.eq.f32.partialorder %v271_v29, inf  ;;  %v278_v41 = vand.u32 2147483648, %v271_v29  ;;  %v260_v42 = vadd.f32 %v314_v38, %v134_v33 }
  0xf8   :  { %v137_v35 = vpop.f32.mrb[2].mxu0  ;;  %vm277_vm2 = vcmp.eq.f32.partialorder %v271_v29, 0.0 }
  0xf9   :  { %v352_v36 = vpop.f32.mrb[3].mxu0 }
 0x101   :  { %v395_v37 = vpop.eup %394 }
 0x102   :  { %v274_v39 = vmul.f32 %v395_v37, %v271_v29 }
 0x104   :  { %v276_v43 = vsel %vm275_vm1, %v271_v29, %v274_v39 }
 0x105   :  { %v279_v44 = vsel %vm277_vm2, %v278_v41, %v276_v43 }
 0x106   :  { %v280_v45 = vmul.f32 %v279_v44, %v272_v40 }
 0x108   :  { %v281_v46 = vadd.f32 %v280_v45, %v260_v42 }
 0x10a   :  { %v282_v47 = vmax.f32 %v281_v46, 0.0 }
 0x10c   :  { %283 = vst [vmem:[#allocation4] sm:$0xff] %v282_v47 }
 0x10d   :  { %407 = shalt.err (!%p404_p4)
}
 0x10e   :  { %s408_s12 = scalar_lea.hbm %s536_s6, 128 }
 0x10f   :  { %p409_p5 = scmp.ne.s32.totalorder %s536_s6, %s408_s12  ;;  %p412_p6 = scmp.lt.u32.totalorder %s408_s12, %s536_s6 }
 0x111   :  { %p414_p7 = pnand %p412_p6, %p409_p5 }
 0x113   :  { %417 = shalt.err (!%p414_p7)
}
 0x114   :  { %293 = dma.vmem_to_hbm [thread:$0]  %s291_s10, 128, %s536_s6, [#allocation5]  }
 0x115   :  { %418 = dma.done.wait [#allocation5], 128  }
 0x116   :  { %419 = vsyncadd [#allocation5], 4294967168 }
 0x117   :  { %297 = vsyncpa [#allocation5], 1 }

</bundles_post_ra>
